<compile_context>
chip_gen: v5e
topology: v5e:2x2
jax: 0.10.0
libtpu: 0.0.40
codegen_flags: <defaults>
</compile_context>

<pallas_src>
import jax
import jax.numpy as jnp
from jax.experimental import pallas as pl
from jax.experimental.pallas import tpu as pltpu

_LANES = 128
_TARGET_BLOCK_BYTES = 2 * 1024 * 1024  # ~2 MiB per block (see notes above)


def _zero_mean_kernel(x_ref, o_ref):
    # Elementwise hot path: x - 0.5 (exact in f32/bf16; input is floating).
    o_ref[...] = x_ref[...] - jnp.asarray(0.5, dtype=x_ref.dtype)


def _sublane_multiple(dtype):
    # Packed sub-32-bit dtypes need taller minimum row tiles.
    itemsize = jnp.dtype(dtype).itemsize
    return {4: 8, 2: 16, 1: 32}.get(itemsize, 8)


def _pick_tile_rows(rows, dtype):
    sub = _sublane_multiple(dtype)
    itemsize = jnp.dtype(dtype).itemsize

    if rows <= sub:
        # Full-extent block (allowed even when rows isn't a sublane multiple).
        return rows

    # Rows giving ~_TARGET_BLOCK_BYTES, rounded down to the packed sublane tile.
    target_rows = max(sub, (_TARGET_BLOCK_BYTES // (_LANES * itemsize)) // sub * sub)

    # Keep at least 2 grid blocks when possible so v7x's second TensorCore
    # gets work via the "parallel" grid axis.
    half_rows = pl.cdiv(pl.cdiv(rows, 2), sub) * sub
    return min(target_rows, max(sub, half_rows))


def _zero_mean_2d(x2d):
    rows, cols = x2d.shape
    tile_rows = _pick_tile_rows(rows, x2d.dtype)
    grid = (pl.cdiv(rows, tile_rows),)  # partial last block handled by Pallas
    return pl.pallas_call(
        _zero_mean_kernel,
        out_shape=jax.ShapeDtypeStruct((rows, cols), x2d.dtype),
        grid_spec=pltpu.PrefetchScalarGridSpec(
            num_scalar_prefetch=0,
            grid=grid,
            in_specs=[pl.BlockSpec((tile_rows, cols), lambda i: (i, 0))],
            out_specs=pl.BlockSpec((tile_rows, cols), lambda i: (i, 0)),
        ),
        compiler_params=pltpu.CompilerParams(
            dimension_semantics=("parallel",),
        ),
    )(x2d)


def zero_mean_transform_forward(x, logpx=None):
    """Pallas implementation of ZeroMeanTransform.forward.

    x: NCHW array (any shape works; the op is elementwise).
    Returns x - 0.5, and (x - 0.5, logpx) if logpx is given.
    """
    orig_shape = x.shape

    # Match PyTorch promotion (int tensor - 0.5 -> float); also prevents the
    # in-kernel 0.5 from silently truncating to 0 for integer dtypes.
    if not jnp.issubdtype(x.dtype, jnp.floating):
        x = x.astype(jnp.float32)

    n = x.size
    flat = x.reshape(-1)

    if n < _LANES:
        # Tiny (or empty) tensor: a dedicated kernel launch is pure overhead.
        y = (flat - jnp.asarray(0.5, flat.dtype)).reshape(orig_shape)
    elif n % _LANES == 0:
        # Common NCHW case: lane-dense reshape, no pad / no slice-back,
        # zero extra HBM traffic around the kernel.
        y = _zero_mean_2d(flat.reshape(n // _LANES, _LANES)).reshape(orig_shape)
    else:
        # Misaligned tail (< 128 elems): run the kernel on the aligned bulk
        # and handle the tiny remainder with plain jnp instead of
        # materializing a padded copy of the whole tensor.
        main = (n // _LANES) * _LANES
        head = _zero_mean_2d(flat[:main].reshape(main // _LANES, _LANES)).reshape(-1)
        tail = flat[main:] - jnp.asarray(0.5, flat.dtype)
        y = jnp.concatenate([head, tail]).reshape(orig_shape)

    if logpx is None:
        return y
    return (y, logpx)


if __name__ == "__main__":
    key = jax.random.PRNGKey(0)
    # layout: NCHW, small test shape (batch=2, channels=4, spatial=16x16)
    x = jax.random.normal(key, (2, 4, 16, 16), dtype=jnp.float32)
    logpx = jnp.zeros((2, 1), dtype=jnp.float32)

    # Without logpx
    y = zero_mean_transform_forward(x)
    y = jax.block_until_ready(y)

    # With logpx (passes through unchanged)
    y2, logpx_out = zero_mean_transform_forward(x, logpx)
    y2 = jax.block_until_ready(y2)
    logpx_out = jax.block_until_ready(logpx_out)

    # Correctness check against the obvious reference
    ref = x - 0.5
    assert jnp.allclose(y, ref, atol=1e-6), "mismatch vs reference"
    assert jnp.allclose(y2, ref, atol=1e-6), "mismatch vs reference (logpx path)"
    assert jnp.array_equal(logpx_out, logpx), "logpx should pass through unchanged"
    assert y.shape == x.shape and y.dtype == x.dtype

    # Exercise the misaligned-tail path too (numel = 2*3*5*7 = 210, not % 128)
    x_odd = jax.random.normal(jax.random.PRNGKey(1), (2, 3, 5, 7), jnp.float32)
    y_odd = jax.block_until_ready(zero_mean_transform_forward(x_odd))
    assert jnp.allclose(y_odd, x_odd - 0.5, atol=1e-6), "mismatch (odd-size path)"

    print("KERNEL_OK")
</pallas_src>

<mosaic_0001>
module attributes {stable_mosaic.version = 11 : i64} {
  func.func @_zero_mean_kernel(%arg0: i32, %arg1: memref<8x128xf32, #tpu.memory_space<vmem>>, %arg2: memref<8x128xf32, #tpu.memory_space<vmem>>) attributes {dimension_semantics = [#tpu.dimension_semantics<parallel>], iteration_bounds = array<i64: 2>, scalar_prefetch = 0 : i64, scratch_operands = 0 : i64, tpu.core_type = #tpu.core_type<tc>, window_params = [{transform_indices = @transform_0, window_bounds = array<i64: 8, 128>}, {transform_indices = @transform_1, window_bounds = array<i64: 8, 128>}]} {
    %c0 = arith.constant 0 : index
    %c0_0 = arith.constant 0 : index
    %0 = vector.load %arg1[%c0, %c0_0] : memref<8x128xf32, #tpu.memory_space<vmem>>, vector<8x128xf32>
    %cst = arith.constant 5.000000e-01 : f32
    %1 = vector.broadcast %cst : f32 to vector<8x128xf32>
    %2 = arith.subf %0, %1 : vector<8x128xf32>
    %c0_1 = arith.constant 0 : index
    %c0_2 = arith.constant 0 : index
    %3 = vector.load %arg2[%c0_1, %c0_2] : memref<8x128xf32, #tpu.memory_space<vmem>>, vector<8x128xf32>
    tpu.vector_store %arg2[%c0_1, %c0_2], %2 {strides = array<i32>} : memref<8x128xf32, #tpu.memory_space<vmem>>, vector<8x128xf32>,
    return
  }
  func.func @transform_0(%arg0: i32) -> (i32, i32) {
    %c0_i32 = arith.constant 0 : i32
    %c0_i32_0 = arith.constant 0 : i32
    return %arg0, %c0_i32 : i32, i32
  }
  func.func @transform_1(%arg0: i32) -> (i32, i32) {
    %c0_i32 = arith.constant 0 : i32
    %c0_i32_0 = arith.constant 0 : i32
    return %arg0, %c0_i32 : i32, i32
  }
}

</mosaic_0001>

<bundles_post_ra>
// kernel: tpu_custom_call.1
= control target key start
LH: loop header
LB: loop body
LE: loop exit
PB: predicated region body
PF: predicated region fallthrough
CT: control target
= control target key end

     0   :  { %6 = vsyncpa [#allocation3], 0  ;;  %s517_s0 = inlined_call_operand.hbm [shape: f32[16,128], index: 0, kind: input, shape index: {}]   ;;  %s518_s1 = inlined_call_operand.hbm [shape: f32[16,128], index: 1, kind: output, shape index: {}]  }
   0x1   :  { %8 = vsyncpa [#allocation3 + $0x1], 0 }
   0x2   :  { %9 = vsyncpa [#allocation4], 0 }
   0x3   :  { %11 = vsyncpa [#allocation4 + $0x1], 0  ;;  %s390_s6 = smov 0   ;;  %s392_s7 = smov 0  }
   0x4   :  { %s394_s8 = smov 0   ;;  %s396_s9 = smov 0  }
   0x5 LB: > { %s411_s10 = sadd.s32 4294967295, %s378_s9   ;;  %s223_s11 = sadd.s32 4294967294, %s378_s9   ;;  %s378_s9 = sphi %s396_s9, %s528_s9   ;;  %s374_s8 = sphi %s394_s8, %s527_s8   ;;  %s370_s7 = sphi %s392_s7, %s526_s7   ;;  %s366_s6 = sphi %s390_s6, %s525_s6  }
   0x6   : > { %s415_s12 = sadd.s32 1, %s378_s9   ;;  %s24_s13 = sadd.s32 1, %s374_s8 }
   0x7   : > { %s21_s14 = ssub.s32 %s378_s9, %s415_s12  ;;  %p31_p0 = scmp.ne.s32.totalorder %s374_s8, %s370_s7 }
   0x8   : > { %p22_p1 = scmp.eq.s32.totalorder %s21_s14, 0  ;;  %p32_p2 = scmp.eq.s32.totalorder %s378_s9, 0 }
   0x9   : > { %p37_p3 = scmp.ne.s32.totalorder %s370_s7, %s366_s6  ;;  %p38_p4 = scmp.eq.s32.totalorder %s411_s10, 0 }
   0xa   : > { %s427_s15 = scalar_select %p22_p1, %s374_s8, %s24_s13  }
   0xb   : > { %p429_p5 = por %p32_p2, %p31_p0  ;;  %p433_p6 = por %p38_p4, %p37_p3 }
   0xc   : > { %p61_p7 = scmp.eq.s32.totalorder %s411_s10, 1  ;;  %p67_p8 = scmp.eq.s32.totalorder %s223_s11, 1 }
   0xd   : > { %p248_p10 = scmp.lt.s32.totalorder %s378_s9, 2  ;;  %s87_s20 = sand.u32 1, %s374_s8  }
   0xe   : > { %p440_p11 = por %p61_p7, %p31_p0  ;;  %p444_p12 = por %p67_p8, %p37_p3 }
   0xf   : > { %s227_s21 = sshll.u32 %s378_s9, 3  ;;  %s226_s22 = sshll.u32 %s87_s20, 3 }
  0x10   : > { %s95_s25 = scalar_lea.hbm %s517_s0, %s227_s21  ;;  %s91_s27 = scalar_lea.vmem [#allocation2], %s226_s22 }
  0x11   : > { %s97_s26 = sshll.u32 %s95_s25, 4  ;;  %s99_s28 = sshll.u32 %s91_s27, 4  ;;  %s98_s26 = int_to_ptr.hbm [resolvable:$true] %s97_s26  ;;  %s100_s28 = int_to_ptr.vmem [resolvable:$true] %s99_s28 }
  0x12   : > { %p455_p13 = pnand %p248_p10, %p429_p5  ;;  %p228_p0 = scmp.ge.s32.totalorder %s378_s9, 1 }
  0x13   : > { %p104_p1 = scmp.lt.s32.totalorder %s378_s9, 3  ;;  %s88_s30 = scalar_lea.sflag [#allocation3], %s87_s20 }
  0x14   : > { %s282_s2 = sshra.s32 %s98_s26, 4  ;;  %p286_p3 = pneg %p455_p13  ;;  %s283_s2 = int_to_ptr.hbm [resolvable:$true] %s282_s2 }
  0x15   : > { %s284_s3 = scalar_lea.hbm %s283_s2, 8  ;;  %s289_s11 = scalar_lea.hbm %s517_s0, 16 }
  0x16   : > { %p285_p2 = scmp.ne.s32.totalorder %s283_s2, %s284_s3  ;;  %p290_p5 = scmp.lt.s32.totalorder %s283_s2, %s517_s0 }
  0x17   : > { %p291_p8 = scmp.lt.s32.totalorder %s289_s11, %s284_s3 }
  0x18   : > { %p287_p4 = pnand %p286_p3, %p285_p2 }
  0x19   : > { %p292_p10 = por %p291_p8, %p290_p5 }
  0x1a   : > { %p288_p7 = pneg %p287_p4 }
  0x1c   : > { %p293_p9 = pnand %p292_p10, %p288_p7 }
  0x1e   : > { %296 = shalt.err (!%p293_p9)
}
  0x1f   : > { %243 = dma.hbm_to_vmem [thread:$0]  (!%p455_p13), %s98_s26, 128, %s100_s28, %s88_s30  }
  0x20   : > { %p105_p2 = pnand %p228_p0, %p104_p1 }
  0x21   : > { %s476_s16 = sand.u32 (!%p105_p2), 1, %s370_s7  }
  0x22   : > { %108 = sbr.rel (%p105_p2) target bundleno = 55 (0x37), region = 24  ;;  %s229_s20 = sshll.u32 (!%p105_p2), %s476_s16, 3 }
  0x23   : > { %s111_s21 = scalar_lea.sflag (!%p105_p2), [#allocation3], %s476_s16  ;;  %s114_s22 = scalar_lea.vmem (!%p105_p2), [#allocation2], %s229_s20 }
  0x27   : > { %357 = dma.done.wait (%p433_p6), %s111_s21, 128  }
  0x28   : > { %359 = vsyncadd (%p433_p6), %s111_s21, 4294967168  ;;  %s233_s23 = sshll.u32 %s411_s10, 3  ;;  %s133_s27 = scalar_lea.vmem [#allocation5], %s229_s20  ;;  %v134_v0 = vld [vmem:[%s114_s22] sm:$0xff] }
  0x29   : > { %s148_s26 = scalar_lea.hbm %s518_s1, %s233_s23  ;;  %s150_s28 = sshll.u32 %s133_s27, 4  ;;  %v231_v1 = vadd.f32 -0.5, %v134_v0  ;;  %s151_s28 = int_to_ptr.vmem [resolvable:$true] %s150_s28 }
  0x2a   : > { %s152_s29 = sshll.u32 %s148_s26, 4  ;;  %s138_s30 = scalar_lea.sflag [#allocation4], %s476_s16  ;;  %s153_s29 = int_to_ptr.hbm [resolvable:$true] %s152_s29 }
  0x2b   : > { %136 = vst [vmem:[%s133_s27] sm:$0xff] %v231_v1  ;;  %s326_s2 = sshra.s32 %s153_s29, 4  ;;  %s332_s4 = scalar_lea.hbm %s518_s1, 16  ;;  %s327_s2 = int_to_ptr.hbm [resolvable:$true] %s326_s2 }
  0x2c   : > { %s328_s17 = scalar_lea.hbm %s327_s2, 8  ;;  %p333_p0 = scmp.lt.s32.totalorder %s327_s2, %s518_s1 }
  0x2d   : > { %p329_p6 = scmp.ne.s32.totalorder %s327_s2, %s328_s17  ;;  %p334_p1 = scmp.lt.s32.totalorder %s332_s4, %s328_s17 }
  0x2f   : > { %p330_p9 = pnand %p329_p6, %p440_p11  ;;  %p335_p3 = por %p334_p1, %p333_p0 }
  0x31   : > { %p331_p13 = pneg %p330_p9 }
  0x33   : > { %p336_p4 = pnand %p335_p3, %p331_p13 }
  0x35   : > { %339 = shalt.err (!%p336_p4)
}
  0x36   : > { %238 = dma.vmem_to_hbm [thread:$0]  (%p440_p11), %s151_s28, 128, %s153_s29, %s138_s30  }
  0x37 PF: > { %s164_s13 = sand.u32 1, %s366_s6   ;;  %p524_p7 = scmp.ge.s32.totalorder %s378_s9, 2 }
  0x38   : > { %s165_s14 = scalar_lea.sflag [#allocation4], %s164_s13 }
  0x39   : > { %p245_p5 = pnand %p524_p7, %p444_p12 }
  0x3b   : > { %p246_p8 = pneg %p245_p5 }
  0x3d   : > { %361 = dma.done.wait (%p246_p8), %s165_s14, 128  }
  0x3e   : > { %363 = vsyncadd (%p246_p8), %s165_s14, 4294967168  ;;  %p14_p10 = scmp.ge.s32.totalorder %s415_s12, 4   ;;  %s525_s6 = smov %s370_s7 }
  0x3f   : > { %s526_s7 = smov %s374_s8  ;;  %s527_s8 = smov %s427_s15 }
  0x40   : > { %s528_s9 = smov %s415_s12  ;;  %16 = sbr.rel (!%p14_p10) target bundleno = 5 (0x5), region = 69 }
  0x45   :  { %171 = vsyncpa [#allocation3], 1 }
  0x46   :  { %173 = vsyncpa [#allocation3 + $0x1], 1 }
  0x47   :  { %174 = vsyncpa [#allocation4], 1 }
  0x48   :  { %176 = vsyncpa [#allocation4 + $0x1], 1 }

</bundles_post_ra>
